<compile_context>
chip_gen: v7x
topology: tpu7x:2x2x1
jax: 0.10.0
libtpu: 0.0.40
codegen_flags: <defaults>
</compile_context>

<pallas_src>
import functools

import jax
import jax.numpy as jnp
from jax.experimental import pallas as pl
from jax.experimental.pallas import tpu as pltpu

N_CLASSES = 10  # auxiliary output dim (digit logits)


def siamese_kernel(x_ref, w1_ref, b1_ref, w2_ref, b2_ref, wt_ref, bt_ref, o_ref):
    # x_ref: (tB, 2*H*W)   rows are [flat(img1) | flat(img2)]
    # w1_ref: (2*H*W, 2*HID) block-diagonal stacked W1; b1_ref: (1, 2*HID)
    # w2_ref: (2*HID, 2*NC)  block-diagonal stacked W2; b2_ref: (1, 2*NC)
    # wt_ref: (2*NC, 2), bt_ref: (1, 2)
    # o_ref:  (tB, 2*NC + 2) -> [d1 | d2 | target_out]
    x = x_ref[...]

    # Fused auxiliary MLP for both image channels: one MXU pass per layer.
    h = jnp.dot(x, w1_ref[...], preferred_element_type=jnp.float32) + b1_ref[...]
    h = jnp.maximum(h, 0.0)
    d = jnp.dot(h, w2_ref[...], preferred_element_type=jnp.float32) + b2_ref[...]
    # d = [d1 | d2], shape (tB, 2*N_CLASSES)

    d1 = d[:, :N_CLASSES]
    d2 = d[:, N_CLASSES:]

    def softmax(z):
        m = jnp.max(z, axis=-1, keepdims=True)
        e = jnp.exp(z - m)
        return e * pl.reciprocal(jnp.sum(e, axis=-1, keepdims=True), approx=True)

    s1 = softmax(d1)
    s2 = softmax(d2)

    # target = Linear(20, 2) on cat([s1, s2]); split-weight form avoids a re-concat.
    wt = wt_ref[...]
    out = (jnp.dot(s1, wt[:N_CLASSES, :], preferred_element_type=jnp.float32)
           + jnp.dot(s2, wt[N_CLASSES:, :], preferred_element_type=jnp.float32)
           + bt_ref[...])

    # Single coalesced output slab: one writeback DMA per tile.
    o_ref[:, :2 * N_CLASSES] = d
    o_ref[:, 2 * N_CLASSES:] = out


def prepare_params(params):
    """Build the block-diagonal stacked weights ONCE (tiny, <100 KiB)."""
    w1, b1, w2, b2, wt, bt = params
    zw1 = jnp.zeros_like(w1)
    zw2 = jnp.zeros_like(w2)
    w1b = jnp.concatenate(
        [jnp.concatenate([w1, zw1], axis=1),
         jnp.concatenate([zw1, w1], axis=1)], axis=0)          # (2*HW, 2*hid)
    b1b = jnp.concatenate([b1, b1], axis=1)                    # (1, 2*hid)
    w2b = jnp.concatenate(
        [jnp.concatenate([w2, zw2], axis=1),
         jnp.concatenate([zw2, w2], axis=1)], axis=0)          # (2*hid, 2*NC)
    b2b = jnp.concatenate([b2, b2], axis=1)                    # (1, 2*NC)
    return tuple(jax.device_put(p) for p in (w1b, b1b, w2b, b2b, wt, bt))


@functools.partial(jax.jit, static_argnames=("block_b",))
def siamese_forward(x, packed, *, block_b=1024):
    """x: (B, 2, H, W) float32 NCHW.  packed = prepare_params(params).
    Returns (d1, d2, out)."""
    B, C, H, W = x.shape
    assert C == 2
    HW = H * W
    w1b, b1b, w2b, b2b, wt, bt = packed
    hid2 = w1b.shape[1]               # 2 * hidden
    assert w1b.shape[0] == 2 * HW

    # Free reshape of contiguous NCHW: row b = [flat(img1_b) | flat(img2_b)].
    x2d = x.reshape(B, 2 * HW)

    # Batch tile: block_b kept a multiple of 8 ((8,128) sublane rule); tB == B
    # (full dim) is always legal when B is small.
    block_b = max(8, (block_b // 8) * 8)
    tB = B if B <= block_b else block_b
    grid = (pl.cdiv(B, tB),)

    out_w = 2 * N_CLASSES + 2
    slab = pl.pallas_call(
        siamese_kernel,
        out_shape=jax.ShapeDtypeStruct((B, out_w), jnp.float32),
        grid=grid,
        in_specs=[
            pl.BlockSpec((tB, 2 * HW), lambda i: (i, 0)),       # x tiles (pipelined)
            pl.BlockSpec((2 * HW, hid2), lambda i: (0, 0)),     # weights: constant
            pl.BlockSpec((1, hid2), lambda i: (0, 0)),          #   index_map ->
            pl.BlockSpec((hid2, 2 * N_CLASSES), lambda i: (0, 0)),  # VMEM-resident,
            pl.BlockSpec((1, 2 * N_CLASSES), lambda i: (0, 0)),     # DMA'd once
            pl.BlockSpec((2 * N_CLASSES, 2), lambda i: (0, 0)),
            pl.BlockSpec((1, 2), lambda i: (0, 0)),
        ],
        out_specs=pl.BlockSpec((tB, out_w), lambda i: (i, 0)),
        compiler_params=pltpu.CompilerParams(
            dimension_semantics=("parallel",),                  # megacore on v7x
            vmem_limit_bytes=32 * 1024 * 1024,
        ),
    )(x2d, w1b, b1b, w2b, b2b, wt, bt)

    d1 = slab[:, :N_CLASSES]
    d2 = slab[:, N_CLASSES:2 * N_CLASSES]
    out = slab[:, 2 * N_CLASSES:]
    return d1, d2, out


def init_params(key, in_dim, hidden):
    ks = jax.random.split(key, 6)
    w1 = jax.random.normal(ks[0], (in_dim, hidden), jnp.float32) * 0.05
    b1 = jax.random.normal(ks[1], (1, hidden), jnp.float32) * 0.01
    w2 = jax.random.normal(ks[2], (hidden, N_CLASSES), jnp.float32) * 0.05
    b2 = jax.random.normal(ks[3], (1, N_CLASSES), jnp.float32) * 0.01
    wt = jax.random.normal(ks[4], (2 * N_CLASSES, 2), jnp.float32) * 0.05
    bt = jax.random.normal(ks[5], (1, 2), jnp.float32) * 0.01
    return (w1, b1, w2, b2, wt, bt)


def reference_forward(x, params):
    """Plain-JAX reference of the same forward pass."""
    B, _, H, W = x.shape
    w1, b1, w2, b2, wt, bt = params

    def aux(xf):
        h = jnp.maximum(xf @ w1 + b1, 0.0)
        return h @ w2 + b2

    d1 = aux(x[:, 0].reshape(B, H * W))
    d2 = aux(x[:, 1].reshape(B, H * W))
    s = jnp.concatenate([jax.nn.softmax(d1, axis=1), jax.nn.softmax(d2, axis=1)], axis=1)
    return d1, d2, s @ wt + bt


def _check(x, params, packed, **kw):
    d1, d2, out = siamese_forward(x, packed, **kw)
    jax.block_until_ready((d1, d2, out))
    r1, r2, rout = reference_forward(x, params)
    assert d1.shape == r1.shape and d2.shape == r2.shape and out.shape == rout.shape
    assert jnp.allclose(d1, r1, atol=1e-4), "d1 mismatch"
    assert jnp.allclose(d2, r2, atol=1e-4), "d2 mismatch"
    # out goes through the approx (EUP) reciprocal in the softmax -> looser atol.
    assert jnp.allclose(out, rout, atol=1e-3), "target output mismatch"
    return d1, d2, out


if __name__ == "__main__":
    key = jax.random.PRNGKey(0)
    k_x, k_x2, k_p = jax.random.split(key, 3)

    B, H, W = 8, 14, 14          # MNIST-pair style input: (B, 2, 14, 14)
    HIDDEN = 32
    params = init_params(k_p, H * W, HIDDEN)
    packed = prepare_params(params)   # stacked weights built once, reused per call

    # Small single-tile run.
    x = jax.random.normal(k_x, (B, 2, H, W), jnp.float32)
    _check(x, params, packed)

    # Multi-tile run (exercises the batch grid / pipelined path).
    x_big = jax.random.normal(k_x2, (32, 2, H, W), jnp.float32)
    _check(x_big, params, packed, block_b=8)

    print("KERNEL_OK")
</pallas_src>

<mosaic_0001>
module attributes {stable_mosaic.version = 11 : i64} {
  func.func @siamese_kernel(%arg0: i32, %arg1: memref<8x392xf32, #tpu.memory_space<vmem>>, %arg2: memref<392x64xf32, #tpu.memory_space<vmem>>, %arg3: memref<1x64xf32, #tpu.memory_space<vmem>>, %arg4: memref<64x20xf32, #tpu.memory_space<vmem>>, %arg5: memref<1x20xf32, #tpu.memory_space<vmem>>, %arg6: memref<20x2xf32, #tpu.memory_space<vmem>>, %arg7: memref<1x2xf32, #tpu.memory_space<vmem>>, %arg8: memref<8x22xf32, #tpu.memory_space<vmem>>) attributes {dimension_semantics = [#tpu.dimension_semantics<parallel>], iteration_bounds = array<i64: 1>, scalar_prefetch = 0 : i64, scratch_operands = 0 : i64, tpu.core_type = #tpu.core_type<tc>, window_params = [{transform_indices = @transform_0, window_bounds = array<i64: 8, 392>}, {pipeline_mode = #tpu.pipeline_mode<synchronous>, transform_indices = @transform_1, window_bounds = array<i64: 392, 64>}, {pipeline_mode = #tpu.pipeline_mode<synchronous>, transform_indices = @transform_2, window_bounds = array<i64: 1, 64>}, {pipeline_mode = #tpu.pipeline_mode<synchronous>, transform_indices = @transform_3, window_bounds = array<i64: 64, 20>}, {pipeline_mode = #tpu.pipeline_mode<synchronous>, transform_indices = @transform_4, window_bounds = array<i64: 1, 20>}, {pipeline_mode = #tpu.pipeline_mode<synchronous>, transform_indices = @transform_5, window_bounds = array<i64: 20, 2>}, {pipeline_mode = #tpu.pipeline_mode<synchronous>, transform_indices = @transform_6, window_bounds = array<i64: 1, 2>}, {transform_indices = @transform_7, window_bounds = array<i64: 8, 22>}]} {
    %c0 = arith.constant 0 : index
    %c0_0 = arith.constant 0 : index
    %0 = vector.load %arg1[%c0, %c0_0] : memref<8x392xf32, #tpu.memory_space<vmem>>, vector<8x392xf32>
    %c0_1 = arith.constant 0 : index
    %c0_2 = arith.constant 0 : index
    %1 = vector.load %arg2[%c0_1, %c0_2] : memref<392x64xf32, #tpu.memory_space<vmem>>, vector<392x64xf32>
    %cst = arith.constant dense<0.000000e+00> : vector<8x64xf32>
    %2 = tpu.matmul %0, %1, %cst {dimension_numbers = #tpu.dot_dimension_numbers<[1], [0], [0], [1], [0, 0, 1, 1], [], []>} : vector<8x392xf32>, vector<392x64xf32>, vector<8x64xf32> -> vector<8x64xf32>
    %c0_3 = arith.constant 0 : index
    %c0_4 = arith.constant 0 : index
    %3 = vector.load %arg3[%c0_3, %c0_4] : memref<1x64xf32, #tpu.memory_space<vmem>>, vector<1x64xf32>
    %4 = vector.broadcast %3 : vector<1x64xf32> to vector<8x64xf32>
    %5 = arith.addf %2, %4 : vector<8x64xf32>
    %cst_5 = arith.constant 0.000000e+00 : f32
    %6 = vector.broadcast %cst_5 : f32 to vector<8x64xf32>
    %7 = arith.maximumf %5, %6 : vector<8x64xf32>
    %c0_6 = arith.constant 0 : index
    %c0_7 = arith.constant 0 : index
    %8 = vector.load %arg4[%c0_6, %c0_7] : memref<64x20xf32, #tpu.memory_space<vmem>>, vector<64x20xf32>
    %cst_8 = arith.constant dense<0.000000e+00> : vector<8x20xf32>
    %9 = tpu.matmul %7, %8, %cst_8 {dimension_numbers = #tpu.dot_dimension_numbers<[1], [0], [0], [1], [0, 0, 1, 1], [], []>} : vector<8x64xf32>, vector<64x20xf32>, vector<8x20xf32> -> vector<8x20xf32>
    %c0_9 = arith.constant 0 : index
    %c0_10 = arith.constant 0 : index
    %10 = vector.load %arg5[%c0_9, %c0_10] : memref<1x20xf32, #tpu.memory_space<vmem>>, vector<1x20xf32>
    %11 = vector.broadcast %10 : vector<1x20xf32> to vector<8x20xf32>
    %12 = arith.addf %9, %11 : vector<8x20xf32>
    %13 = vector.extract_strided_slice %12 {offsets = [0, 0], sizes = [8, 10], strides = [1, 1]} : vector<8x20xf32> to vector<8x10xf32>
    %14 = vector.extract_strided_slice %12 {offsets = [0, 10], sizes = [8, 10], strides = [1, 1]} : vector<8x20xf32> to vector<8x10xf32>
    %cst_11 = arith.constant dense<0xFF800000> : vector<8xf32>
    %15 = vector.multi_reduction <maximumf>, %13, %cst_11 [1] : vector<8x10xf32> to vector<8xf32>
    %16 = vector.shape_cast %15 : vector<8xf32> to vector<8x1xf32>
    %17 = vector.broadcast %16 : vector<8x1xf32> to vector<8x10xf32>
    %18 = arith.subf %13, %17 : vector<8x10xf32>
    %19 = math.exp %18 : vector<8x10xf32>
    %cst_12 = arith.constant dense<0.000000e+00> : vector<8xf32>
    %20 = vector.multi_reduction <add>, %19, %cst_12 [1] : vector<8x10xf32> to vector<8xf32>
    %21 = vector.shape_cast %20 : vector<8xf32> to vector<8x1xf32>
    %22 = tpu.reciprocal %21 {approx = true} : vector<8x1xf32> -> vector<8x1xf32>
    %23 = vector.broadcast %22 : vector<8x1xf32> to vector<8x10xf32>
    %24 = arith.mulf %19, %23 : vector<8x10xf32>
    %cst_13 = arith.constant dense<0xFF800000> : vector<8xf32>
    %25 = vector.multi_reduction <maximumf>, %14, %cst_13 [1] : vector<8x10xf32> to vector<8xf32>
    %26 = vector.shape_cast %25 : vector<8xf32> to vector<8x1xf32>
    %27 = vector.broadcast %26 : vector<8x1xf32> to vector<8x10xf32>
    %28 = arith.subf %14, %27 : vector<8x10xf32>
    %29 = math.exp %28 : vector<8x10xf32>
    %cst_14 = arith.constant dense<0.000000e+00> : vector<8xf32>
    %30 = vector.multi_reduction <add>, %29, %cst_14 [1] : vector<8x10xf32> to vector<8xf32>
    %31 = vector.shape_cast %30 : vector<8xf32> to vector<8x1xf32>
    %32 = tpu.reciprocal %31 {approx = true} : vector<8x1xf32> -> vector<8x1xf32>
    %33 = vector.broadcast %32 : vector<8x1xf32> to vector<8x10xf32>
    %34 = arith.mulf %29, %33 : vector<8x10xf32>
    %c0_15 = arith.constant 0 : index
    %c0_16 = arith.constant 0 : index
    %35 = vector.load %arg6[%c0_15, %c0_16] : memref<20x2xf32, #tpu.memory_space<vmem>>, vector<20x2xf32>
    %36 = vector.extract_strided_slice %35 {offsets = [0, 0], sizes = [10, 2], strides = [1, 1]} : vector<20x2xf32> to vector<10x2xf32>
    %cst_17 = arith.constant dense<0.000000e+00> : vector<8x2xf32>
    %37 = tpu.matmul %24, %36, %cst_17 {dimension_numbers = #tpu.dot_dimension_numbers<[1], [0], [0], [1], [0, 0, 1, 1], [], []>} : vector<8x10xf32>, vector<10x2xf32>, vector<8x2xf32> -> vector<8x2xf32>
    %38 = vector.extract_strided_slice %35 {offsets = [10, 0], sizes = [10, 2], strides = [1, 1]} : vector<20x2xf32> to vector<10x2xf32>
    %cst_18 = arith.constant dense<0.000000e+00> : vector<8x2xf32>
    %39 = tpu.matmul %34, %38, %cst_18 {dimension_numbers = #tpu.dot_dimension_numbers<[1], [0], [0], [1], [0, 0, 1, 1], [], []>} : vector<8x10xf32>, vector<10x2xf32>, vector<8x2xf32> -> vector<8x2xf32>
    %40 = arith.addf %37, %39 : vector<8x2xf32>
    %c0_19 = arith.constant 0 : index
    %c0_20 = arith.constant 0 : index
    %41 = vector.load %arg7[%c0_19, %c0_20] : memref<1x2xf32, #tpu.memory_space<vmem>>, vector<1x2xf32>
    %42 = vector.broadcast %41 : vector<1x2xf32> to vector<8x2xf32>
    %43 = arith.addf %40, %42 : vector<8x2xf32>
    %c0_21 = arith.constant 0 : index
    %c0_22 = arith.constant 0 : index
    %44 = vector.load %arg8[%c0_21, %c0_22] : memref<8x22xf32, #tpu.memory_space<vmem>>, vector<8x20xf32>
    tpu.vector_store %arg8[%c0_21, %c0_22], %12 {strides = array<i32>} : memref<8x22xf32, #tpu.memory_space<vmem>>, vector<8x20xf32>,
    %c0_23 = arith.constant 0 : index
    %c20 = arith.constant 20 : index
    %45 = vector.load %arg8[%c0_23, %c20] : memref<8x22xf32, #tpu.memory_space<vmem>>, vector<8x2xf32>
    tpu.vector_store %arg8[%c0_23, %c20], %43 {strides = array<i32>} : memref<8x22xf32, #tpu.memory_space<vmem>>, vector<8x2xf32>,
    return
  }
  func.func @transform_0(%arg0: i32) -> (i32, i32) {
    %c0_i32 = arith.constant 0 : i32
    %c0_i32_0 = arith.constant 0 : i32
    return %arg0, %c0_i32 : i32, i32
  }
  func.func @transform_1(%arg0: i32) -> (i32, i32) {
    %c0_i32 = arith.constant 0 : i32
    %c0_i32_0 = arith.constant 0 : i32
    %c0_i32_1 = arith.constant 0 : i32
    return %c0_i32, %c0_i32_0 : i32, i32
  }
  func.func @transform_2(%arg0: i32) -> (i32, i32) {
    %c0_i32 = arith.constant 0 : i32
    %c0_i32_0 = arith.constant 0 : i32
    %c0_i32_1 = arith.constant 0 : i32
    return %c0_i32, %c0_i32_0 : i32, i32
  }
  func.func @transform_3(%arg0: i32) -> (i32, i32) {
    %c0_i32 = arith.constant 0 : i32
    %c0_i32_0 = arith.constant 0 : i32
    %c0_i32_1 = arith.constant 0 : i32
    return %c0_i32, %c0_i32_0 : i32, i32
  }
  func.func @transform_4(%arg0: i32) -> (i32, i32) {
    %c0_i32 = arith.constant 0 : i32
    %c0_i32_0 = arith.constant 0 : i32
    %c0_i32_1 = arith.constant 0 : i32
    return %c0_i32, %c0_i32_0 : i32, i32
  }
  func.func @transform_5(%arg0: i32) -> (i32, i32) {
    %c0_i32 = arith.constant 0 : i32
    %c0_i32_0 = arith.constant 0 : i32
    %c0_i32_1 = arith.constant 0 : i32
    return %c0_i32, %c0_i32_0 : i32, i32
  }
  func.func @transform_6(%arg0: i32) -> (i32, i32) {
    %c0_i32 = arith.constant 0 : i32
    %c0_i32_0 = arith.constant 0 : i32
    %c0_i32_1 = arith.constant 0 : i32
    return %c0_i32, %c0_i32_0 : i32, i32
  }
  func.func @transform_7(%arg0: i32) -> (i32, i32) {
    %c0_i32 = arith.constant 0 : i32
    %c0_i32_0 = arith.constant 0 : i32
    return %arg0, %c0_i32 : i32, i32
  }
}

</mosaic_0001>

<bundles_post_ra>
// kernel: siamese_forward.1
= control target key start
LH: loop header
LB: loop body
LE: loop exit
PB: predicated region body
PF: predicated region fallthrough
CT: control target
= control target key end

     0   :  { %v713_v3 = vmov 0.0|0.0   ;;  %vm86_vm0 = vcmask 64512   ;;  %vm715_vm1 = vmmov 0   ;;  %vm246_vm2 = vcmask 523264   ;;  %s1001_s1 = inlined_call_operand.vmem [shape: f32[392,64], index: 1, kind: input, shape index: {}]   ;;  %s1002_s0 = inlined_call_operand.vmem [shape: f32[8,392], index: 0, kind: input, shape index: {}]   ;;  %s1003_s3 = inlined_call_operand.vmem [shape: f32[64,20], index: 3, kind: input, shape index: {}]   ;;  %s1004_s2 = inlined_call_operand.vmem [shape: f32[1,64], index: 2, kind: input, shape index: {}]   ;;  %s1005_s4 = inlined_call_operand.vmem [shape: f32[1,20], index: 4, kind: input, shape index: {}]   ;;  %s1006_s7 = inlined_call_operand.vmem [shape: f32[8,22], index: 7, kind: output, shape index: {}]   ;;  %s1007_s5 = inlined_call_operand.vmem [shape: f32[20,2], index: 5, kind: input, shape index: {}]   ;;  %s1008_s6 = inlined_call_operand.vmem [shape: f32[1,2], index: 6, kind: input, shape index: {}]  }
   0x1   :  { %v46_v0 = vld [vmem:[%s1001_s1 + $0x80] sm:$0xff]  ;;  %v47_v1 = vld [vmem:[%s1001_s1 + $0x88] sm:$0xff]  ;;  %655 = vmatprep.subr.bf16.mxu1 %v713_v3  ;;  %v48_v10 = vld [vmem:[%s1001_s1 + $0x90] sm:$0xff]  ;;  %vm332_vm3 = vcmask 162896   ;;  %vm320_vm4 = vcmask 80896   ;;  %vm519_vm5 = vcmask 162816  }
   0x2   :  { %v30_v2 = vld [vmem:[%s1001_s1] sm:$0xff]  ;;  %v623_v4 = vpack.c.bf16 %v47_v1, %v46_v0  ;;  %v31_v5 = vld [vmem:[%s1001_s1 + $0x8] sm:$0xff]  ;;  %v49_v11 = vld [vmem:[%s1001_s1 + $0x98] sm:$0xff]  ;;  %vm356_vm6 = vcmask 1045504   ;;  %vm363_vm7 = vcmask 1041408   ;;  %vm717_vm8 = vmmov 1  }
   0x3   :  { %v62_v6 = vld [vmem:[%s1001_s1 + $0x100] sm:$0xff]  ;;  %v63_v7 = vld [vmem:[%s1001_s1 + $0x108] sm:$0xff]  ;;  %v625_v8 = vpack.c.bf16 %v31_v5, %v30_v2  ;;  %v32_v12 = vld [vmem:[%s1001_s1 + $0x10] sm:$0xff]  ;;  %v627_v13 = vpack.c.bf16 %v49_v11, %v48_v10  ;;  %vm525_vm10 = vcmask 179360  }
   0x4   :  { %v656_v9 = vpack.c.bf16 %v63_v7, %v62_v6  ;;  %624 = vmatprep.subr.bf16.mxu0 %v623_v4  ;;  %v33_v14 = vld [vmem:[%s1001_s1 + $0x18] sm:$0xff]  ;;  %v64_v15 = vld [vmem:[%s1001_s1 + $0x110] sm:$0xff]  ;;  %v50_v19 = vld [vmem:[%s1001_s1 + $0xa0] sm:$0xff] }
   0x5   :  { %v65_v16 = vld [vmem:[%s1001_s1 + $0x118] sm:$0xff]  ;;  %626 = vmatpush3.bf16.msra.mxu0 %v625_v8  ;;  %v629_v17 = vpack.c.bf16 %v33_v14, %v32_v12  ;;  %v51_v20 = vld [vmem:[%s1001_s1 + $0xa8] sm:$0xff]  ;;  %v34_v21 = vld [vmem:[%s1001_s1 + $0x20] sm:$0xff] }
   0x6   :  { %657 = vmatpush1.bf16.msra.mxu1 %v656_v9  ;;  %v659_v18 = vpack.c.bf16 %v65_v16, %v64_v15  ;;  %628 = vmatprep.subr.bf16.mxu0 %v627_v13  ;;  %v631_v22 = vpack.c.bf16 %v51_v20, %v50_v19  ;;  %v35_v23 = vld [vmem:[%s1001_s1 + $0x28] sm:$0xff]  ;;  %v66_v24 = vld [vmem:[%s1001_s1 + $0x120] sm:$0xff]  ;;  %v52_v26 = vld [vmem:[%s1001_s1 + $0xb0] sm:$0xff]  ;;  %v714_v16 = vmov 0.0  }
   0x7   :  { %658 = vmatprep.subr.bf16.mxu1 %v713_v3  ;;  %v67_v25 = vld [vmem:[%s1001_s1 + $0x128] sm:$0xff]  ;;  %v53_v27 = vld [vmem:[%s1001_s1 + $0xb8] sm:$0xff]  ;;  %v633_v28 = vpack.c.bf16 %v35_v23, %v34_v21  ;;  %v36_v30 = vld [vmem:[%s1001_s1 + $0x30] sm:$0xff] }
   0x8   :  { %v662_v29 = vpack.c.bf16 %v67_v25, %v66_v24  ;;  %v635_v31 = vpack.c.bf16 %v53_v27, %v52_v26  ;;  %v37_v32 = vld [vmem:[%s1001_s1 + $0x38] sm:$0xff]  ;;  %v68_v33 = vld [vmem:[%s1001_s1 + $0x130] sm:$0xff]  ;;  %v54_v35 = vld [vmem:[%s1001_s1 + $0xc0] sm:$0xff] }
   0x9   :  { %630 = vmatpush3.bf16.msra.mxu0 %v629_v17  ;;  %v69_v34 = vld [vmem:[%s1001_s1 + $0x138] sm:$0xff]  ;;  %v55_v36 = vld [vmem:[%s1001_s1 + $0xc8] sm:$0xff]  ;;  %v637_v37 = vpack.c.bf16 %v37_v32, %v36_v30  ;;  %v38_v39 = vld [vmem:[%s1001_s1 + $0x40] sm:$0xff] }
   0xa   :  { %660 = vmatpush1.bf16.msra.mxu1 %v659_v18  ;;  %632 = vmatprep.subr.bf16.mxu0 %v631_v22  ;;  %v665_v38 = vpack.c.bf16 %v69_v34, %v68_v33  ;;  %v639_v40 = vpack.c.bf16 %v55_v36, %v54_v35  ;;  %v39_v41 = vld [vmem:[%s1001_s1 + $0x48] sm:$0xff]  ;;  %v70_v42 = vld [vmem:[%s1001_s1 + $0x140] sm:$0xff]  ;;  %v56_v44 = vld [vmem:[%s1001_s1 + $0xd0] sm:$0xff] }
   0xb   :  { %661 = vmatprep.subr.bf16.mxu1 %v713_v3  ;;  %v71_v43 = vld [vmem:[%s1001_s1 + $0x148] sm:$0xff]  ;;  %v57_v45 = vld [vmem:[%s1001_s1 + $0xd8] sm:$0xff]  ;;  %v641_v47 = vpack.c.bf16 %v39_v41, %v38_v39  ;;  %v40_v49 = vld [vmem:[%s1001_s1 + $0x50] sm:$0xff] }
   0xc   :  { %v27_v46 = vld [vmem:[%s1002_s0 + $0x8] sm:$0xff]  ;;  %v668_v48 = vpack.c.bf16 %v71_v43, %v70_v42  ;;  %v41_v50 = vld [vmem:[%s1001_s1 + $0x58] sm:$0xff]  ;;  %v643_v51 = vpack.c.bf16 %v57_v45, %v56_v44  ;;  %v72_v52 = vld [vmem:[%s1001_s1 + $0x150] sm:$0xff] }
   0xd   :  { %634 = vmatpush3.bf16.msra.mxu0 %v633_v28  ;;  %v73_v53 = vld [vmem:[%s1001_s1 + $0x158] sm:$0xff]  ;;  %v58_v55 = vld [vmem:[%s1001_s1 + $0xe0] sm:$0xff]  ;;  %v59_v56 = vld [vmem:[%s1001_s1 + $0xe8] sm:$0xff]  ;;  %154 = vmatprep.mubr.f32.mxu0 %v27_v46  ;;  %v645_v57 = vpack.c.bf16 %v41_v50, %v40_v49 }
   0xe   :  { %663 = vmatpush1.bf16.msra.mxu1 %v662_v29  ;;  %636 = vmatprep.subr.bf16.mxu0 %v635_v31  ;;  %v29_v54 = vld [vmem:[%s1002_s0 + $0x18] sm:$0xff]  ;;  %v671_v58 = vpack.c.bf16 %v73_v53, %v72_v52  ;;  %v42_v59 = vld [vmem:[%s1001_s1 + $0x60] sm:$0xff]  ;;  %v647_v60 = vpack.c.bf16 %v59_v56, %v58_v55  ;;  %v43_v61 = vld [vmem:[%s1001_s1 + $0x68] sm:$0xff] }
   0xf   :  { %664 = vmatprep.subr.bf16.mxu1 %v713_v3  ;;  %532 = vmatprep.mubr.msk.f32.mxu1 %vm86_vm0, %v29_v54  ;;  %v74_v62 = vld [vmem:[%s1001_s1 + $0x160] sm:$0xff]  ;;  %v75_v63 = vld [vmem:[%s1001_s1 + $0x168] sm:$0xff]  ;;  %v60_v0 = vld [vmem:[%s1001_s1 + $0xf0] sm:$0xff]  ;;  %v649_v2 = vpack.c.bf16 %v43_v61, %v42_v59 }
  0x10   :  { %v61_v1 = vld [vmem:[%s1001_s1 + $0xf8] sm:$0xff]  ;;  %v674_v4 = vpack.c.bf16 %v75_v63, %v74_v62  ;;  %v44_v5 = vld [vmem:[%s1001_s1 + $0x70] sm:$0xff]  ;;  %v231_v12 = vld [vmem:[%s1003_s3] sm:$0xff] }
  0x11   :  { %638 = vmatpush3.bf16.msra.mxu0 %v637_v37  ;;  %v651_v6 = vpack.c.bf16 %v61_v1, %v60_v0  ;;  %v45_v7 = vld [vmem:[%s1001_s1 + $0x78] sm:$0xff]  ;;  %v76_v8 = vld [vmem:[%s1001_s1 + $0x170] sm:$0xff]  ;;  %v232_v13 = vld [vmem:[%s1003_s3 + $0x8] sm:$0xff] }
  0x12   :  { %666 = vmatpush1.bf16.msra.mxu1 %v665_v38  ;;  %640 = vmatprep.subr.bf16.mxu0 %v639_v40  ;;  %v77_v9 = vld [vmem:[%s1001_s1 + $0x178] sm:$0xff]  ;;  %v653_v10 = vpack.c.bf16 %v45_v7, %v44_v5  ;;  %v26_v14 = vld [vmem:[%s1002_s0] sm:$0xff]  ;;  %v680_v15 = vpack.c.bf16 %v232_v13, %v231_v12  ;;  %v233_v18 = vld [vmem:[%s1003_s3 + $0x10] sm:$0xff] }
  0x13   :  { %667 = vmatprep.subr.bf16.mxu1 %v713_v3  ;;  %v677_v11 = vpack.c.bf16 %v77_v9, %v76_v8  ;;  %v78_v17 = vld [vmem:[%s1001_s1 + $0x180] sm:$0xff]  ;;  %v234_v19 = vld [vmem:[%s1003_s3 + $0x18] sm:$0xff]  ;;  %v28_v20 = vld [vmem:[%s1002_s0 + $0x10] sm:$0xff] }
  0x14   :  { %v683_v21 = vpack.c.bf16 %v234_v19, %v233_v18  ;;  %v235_v22 = vld [vmem:[%s1003_s3 + $0x20] sm:$0xff]  ;;  %v236_v23 = vld [vmem:[%s1003_s3 + $0x28] sm:$0xff]  ;;  %v237_v25 = vld [vmem:[%s1003_s3 + $0x30] sm:$0xff] }
  0x15   :  { %642 = vmatpush3.bf16.msra.mxu0 %v641_v47  ;;  %v686_v24 = vpack.c.bf16 %v236_v23, %v235_v22  ;;  %v238_v26 = vld [vmem:[%s1003_s3 + $0x38] sm:$0xff]  ;;  %v531_v30 = vld [vmem:[%s1004_s2] ss:$0 sm:$0xff]  ;;  %v349_v54 = vld [vmem:[%s1007_s5 + $0x8] sm:$0xff] }
  0x16   :  { %669 = vmatpush1.bf16.msra.mxu1 %v668_v48  ;;  %644 = vmatprep.subr.bf16.mxu0 %v643_v51  ;;  %v689_v27 = vpack.c.bf16 %v238_v26, %v237_v25  ;;  %v533_v37 = vld [vmem:[%s1005_s4] ss:$0 sm:$0xff]  ;;  %s716_s4 = smov 118   ;;  %v350_v55 = vld [vmem:[%s1007_s5 + $0x10] sm:$0xf]  ;;  %v357_v56 = vrot.slane %v349_v54, 2  ;;  %vm979_vm9 = vmpackc.low %vm363_vm7, %vm717_vm8 }
  0x17   :  { %670 = vmatprep.subr.bf16.mxu1 %v713_v3  ;;  %v348_v1 = vld [vmem:[%s1007_s5] sm:$0xff]  ;;  %s718_s5 = smov 20  }
  0x18   :  { %v539_v9 = vld [vmem:[%s1008_s6] ss:$0 sm:$0xff] }
  0x19   :  { %646 = vmatpush3.bf16.msra.mxu0 %v645_v57  ;;  %v358_v57 = vrot.slane %v350_v55, 2 }
  0x1a   :  { %672 = vmatpush1.bf16.msra.mxu1 %v671_v58  ;;  %648 = vmatprep.subr.bf16.mxu0 %v647_v60 }
  0x1b   :  { %673 = vmatprep.subr.bf16.mxu1 %v713_v3  ;;  %v359_v58 = vsel %vm356_vm6, %v357_v56, %v358_v57 }
  0x1c   :  { %v692_v60 = vpack.c.bf16 %v358_v57, %v359_v58 }
  0x1d   :  { %650 = vmatpush3.bf16.msra.mxu0 %v649_v2  ;;  %v696_v2 = vpack.c.bf16 %v349_v54, %v348_v1 }
  0x1e   :  { %675 = vmatpush1.bf16.msra.mxu1 %v674_v4  ;;  %652 = vmatprep.subr.bf16.mxu0 %v651_v6 }
  0x1f   :  { %676 = vmatprep.subr.bf16.mxu1 %v713_v3 }
  0x21   :  { %654 = vmatpush3.bf16.msra.mxu0 %v653_v10 }
  0x22   :  { %678 = vmatpush1.bf16.msra.mxu1 %v677_v11  ;;  %679 = vmatprep.subr.bf16.mxu0 %v713_v3 }
  0x23   :  { %192 = vmatprep.subr.mxu1 %v714_v16 }
  0x24   :  { %155 = vmatmul.mubr.f32.vlgmr.msra.gmra.mrb[0].mxu0 %v26_v14 }
  0x25   :  { %681 = vmatpush3.bf16.msra.mxu0 %v680_v15  ;;  %606 = vmatprep.mubr.msk.f32.mxu0 %vm715_vm1, %v714_v16 }
  0x26   :  { %193 = vmatpush1.msra.mxu1 %v78_v17  ;;  %682 = vmatprep.subr.bf16.mxu0 %v713_v3 }
  0x27   :  { %225 = vmatmul.mubr.f32.vlgmr.msra.gmra.mrb[0].mxu1 %v28_v20  ;;  %691 = vmatprep.subr.bf16.mxu1 %v713_v3 }
  0x28   :  { %613 = vmatprep.mubr.msk.f32.mxu1 %vm715_vm1, %v714_v16  ;;  %694 = vmatpush3.bf16.msk.msra.mxu1 %vm979_vm9, %v692_v60 }
  0x29   :  { %684 = vmatpush3.bf16.msra.mxu0 %v683_v21  ;;  %695 = vmatprep.subr.bf16.mxu1 %v713_v3 }
  0x2a   :  { %685 = vmatprep.subr.bf16.mxu0 %v713_v3 }
  0x2d   :  { %687 = vmatpush3.bf16.msra.mxu0 %v686_v24 }
  0x2e   :  { %688 = vmatprep.subr.bf16.mxu0 %v713_v3 }
  0x31   :  { %690 = vmatpush3.bf16.msra.mxu0 %v689_v27 }
  0xf7   :  { %v572_v28 = vpop.f32.mrb[0].mxu0 }
  0xf8   :  { %v573_v29 = vpop.f32.mrb[1].mxu0 }
  0xf9   :  { %v574_v31 = vadd.f32 %v573_v29, %v572_v28 }
  0xfa   :  { %v226_v32 = vpop.f32.mrb[0].mxu1 }
  0xfb   :  { %v228_v33 = vpop.f32.mrb[1].mxu1  ;;  %v157_v34 = vadd.f32 %v574_v31, %v531_v30 }
  0xfd   :  { %v227_v35 = vadd.f32 %v226_v32, %v157_v34 }
  0xff   :  { %v230_v36 = vmax.f32 %v227_v35, 0.0 }
 0x101   :  { %607 = vmatmul.mubr.msk.f32.vlgmr.msra.gmra.mrb[2].mxu0 %vm246_vm2, %v230_v36 }
 0x1d4   :  { %v316_v38 = vpop.f32.mrb[2].mxu0 }
 0x1d5   :  { %v317_v39 = vadd.f32 %v533_v37, %v316_v38  ;;  %v608_v40 = vpop.f32.mrb[3].mxu0 }
 0x1d7   :  { %v333_v41 = vsel %vm332_vm3, %v317_v39, -inf  ;;  %v321_v42 = vsel %vm320_vm4, %v317_v39, -inf  ;;  %520 = vst.msk [vmem:[%s1006_s7] sm:$0xff] %vm519_vm5, %v317_v39 }
 0x1d8   :  { %334 = vmax.xlane.f32.xlu0 %v333_v41  ;;  %322 = vmax.xlane.f32.xlu1 %v321_v42 }
 0x265   :  { %v335_v43 = vpop.xlane.xlu0 %334  ;;  %v323_v47 = vpop.xlane.xlu1 %322 }
 0x266   :  { %v336_v44 = vsub.f32 %v317_v39, %v335_v43  ;;  %v324_v48 = vsub.f32 %v317_v39, %v323_v47 }
 0x268   :  { %v337_v45 = vmul.f32 1.442695, %v336_v44  ;;  %v325_v49 = vmul.f32 1.442695, %v324_v48 }
 0x26a   :  { %705 = vpow2.f32 %v337_v45 }
 0x26b   :  { %707 = vpow2.f32 %v325_v49 }
 0x274   :  { %v706_v46 = vpop.eup %705 }
 0x275   :  { %340 = vrot.lane.b32.xlu0 %v706_v46, %s716_s4  ;;  %v708_v52 = vpop.eup %707 }
 0x276   :  { %v327_v53 = vsel %vm320_vm4, %v708_v52, 0.0 }
 0x2e7   :  { %v341_v50 = vpop.permute.xlu0 %340 }
 0x2e8   :  { %v343_v51 = vsel %vm320_vm4, %v341_v50, 0.0 }
 0x2e9   :  { %344 = vadd.xlane.f32.xlu1 %v343_v51 }
 0x2ed   :  { %328 = vadd.xlane.f32.xlu1 %v327_v53 }
 0x376   :  { %v345_v61 = vpop.xlane.xlu1 %344 }
 0x377   :  { %709 = vrcp.f32 %v345_v61 }
 0x37a   :  { %v329_v0 = vpop.xlane.xlu1 %328 }
 0x37b   :  { %711 = vrcp.f32 %v329_v0 }
 0x381   :  { %v710_v62 = vpop.eup %709 }
 0x382   :  { %v347_v63 = vmul.f32 %v710_v62, %v706_v46 }
 0x384   :  { %352 = vrot.lane.b32.xlu1 %v347_v63, %s716_s4 }
 0x385   :  { %v712_v4 = vpop.eup %711 }
 0x386   :  { %v331_v3 = vmul.f32 %v712_v4, %v708_v52 }
 0x3f6   :  { %v353_v5 = vpop.permute.xlu1 %352 }
 0x3f7   :  { %614 = vmatmul.mubr.msk.f32.vlgmr.msra.gmra.mrb[2].mxu1 %vm320_vm4, %v353_v5 }
 0x3f8   :  { %698 = vmatpush3.bf16.msk.msra.mxu1 %vm979_vm9, %v696_v2  ;;  %620 = vmatprep.mubr.msk.f32.mxu1 %vm715_vm1, %v714_v16 }
 0x3fb   :  { %621 = vmatmul.mubr.msk.f32.vlgmr.msra.gmra.mrb[4].mxu1 %vm320_vm4, %v331_v3 }
 0x4ca   :  { %v432_v6 = vpop.f32.mrb[2].mxu1 }
 0x4cb   :  { %v615_v7 = vpop.f32.mrb[3].mxu1 }
 0x4ce   :  { %v507_v8 = vpop.f32.mrb[4].mxu1 }
 0x4cf   :  { %v508_v10 = vadd.f32 %v507_v8, %v432_v6  ;;  %v622_v11 = vpop.f32.mrb[5].mxu1 }
 0x4d1   :  { %v518_v12 = vadd.f32 %v539_v9, %v508_v10 }
 0x4d3   :  { %522 = vrot.lane.b32.xlu0 %v518_v12, %s718_s5 }
 0x545   :  { %v523_v13 = vpop.permute.xlu0 %522 }
 0x546   :  { %526 = vst.msk [vmem:[%s1006_s7] sm:$0xff] %vm525_vm10, %v523_v13 }

</bundles_post_ra>
